<compile_context>
chip_gen: v7x
topology: tpu7x:2x2x1
jax: 0.10.0
libtpu: 0.0.40
codegen_flags: <defaults>
</compile_context>

<pallas_src>
import jax
import jax.numpy as jnp
from jax import lax
from jax.experimental import pallas as pl
from jax.experimental.pallas import tpu as pltpu

knCells = 50
pnCells = 3

_MAX_CHUNK = 2048  # timesteps folded into one grid step (VMEM is a non-factor here)


def kenyon_kernel(state_ref, coeff_ref, planes_ref, out_ref):
    """One grid step = one chunk of timesteps; recurrence carried in registers."""
    @pl.when(pl.program_id(0) == 0)
    def _():
        out_ref[...] = state_ref[...]

    n_planes = planes_ref.shape[0]   # P+2   (static)
    n_steps = coeff_ref.shape[0]     # CHUNK (static)

    # Resident weight/apl/bias planes: hoist the loads out of the step loop
    # (each plane is one padded (B,K) vreg).
    planes = [planes_ref[p] for p in range(n_planes)]

    def step(t, state):
        co = coeff_ref[t]                               # (B, P+3) this step
        acc = co[:, 0:1] * planes[0]
        for p in range(1, n_planes):                    # unrolled 5-term MAC
            acc = acc + co[:, p:p + 1] * planes[p]
        act = jnp.maximum(acc, 0.0)                     # relu(dt_tau * x)
        # Last coeff column = per-step decay (1 - dt/tau; 1.0 for padded steps).
        return state * co[:, n_planes:n_planes + 1] + act

    out_ref[...] = lax.fori_loop(0, n_steps, step, out_ref[...],
                                 unroll=min(8, n_steps))


def _kenyon_pallas(state, coeff_seq, planes, chunk):
    """state (B,K) f32; coeff_seq (T_pad,B,P+3) f32; planes (P+2,B,K) f32."""
    B, K = state.shape
    t_pad, _, C = coeff_seq.shape
    n_planes = planes.shape[0]
    grid = t_pad // chunk

    return pl.pallas_call(
        kenyon_kernel,
        out_shape=jax.ShapeDtypeStruct((B, K), jnp.float32),
        grid=(grid,),
        in_specs=[
            pl.BlockSpec((B, K), lambda c: (0, 0)),               # initial state
            pl.BlockSpec((chunk, B, C), lambda c: (c, 0, 0)),     # per-step coeffs (streamed)
            pl.BlockSpec((n_planes, B, K), lambda c: (0, 0, 0)),  # weight planes (resident)
        ],
        out_specs=pl.BlockSpec((B, K), lambda c: (0, 0)),         # state accumulator
        compiler_params=pltpu.CompilerParams(
            dimension_semantics=("arbitrary",)),                  # recurrence -> sequential
    )(state, coeff_seq, planes)


def kenyon_rollout(state, pn_inputs_seq, apl_inputs_seq, pn_weight, apl_weight,
                   bias, dt, tau, *, chunk=None):
    """Run T KenyonCell steps inside one pallas_call.
    state: (B,K); pn_inputs_seq: (T,B,1,P); apl_inputs_seq: (T,B,1);
    pn_weight: (B,P,K); apl_weight: (1,K); bias: (K,). Returns final state (B,K)."""
    B, K = state.shape
    T = pn_inputs_seq.shape[0]
    P = pn_inputs_seq.shape[-1]

    # dt/tau must be > 0 for the relu folding (relu(dt_tau*x) == dt_tau*relu(x)).
    dt_tau = jnp.float32(dt) / jnp.float32(tau)
    decay = jnp.float32(1.0) - dt_tau

    # Plane stack (P+2, B, K): [dt_tau*pn_w_p, -dt_tau*apl_w, dt_tau*bias].
    pn_w_t = jnp.transpose(pn_weight.astype(jnp.float32), (1, 0, 2))          # (P,B,K)
    apl_plane = -jnp.broadcast_to(
        apl_weight.astype(jnp.float32).reshape(1, 1, K), (1, B, K))
    bias_plane = jnp.broadcast_to(
        bias.astype(jnp.float32).reshape(1, 1, K), (1, B, K))
    planes = dt_tau * jnp.concatenate([pn_w_t, apl_plane, bias_plane], axis=0)  # (P+2,B,K)

    # Per-step coefficients (T, B, P+3): [pn_0..pn_{P-1}, apl_in, 1 (bias), decay].
    pn_seq = pn_inputs_seq.reshape(T, B, P).astype(jnp.float32)
    apl_seq = apl_inputs_seq.reshape(T, B, 1).astype(jnp.float32)
    coeff = jnp.concatenate(
        [pn_seq, apl_seq,
         jnp.ones((T, B, 1), jnp.float32),
         jnp.broadcast_to(decay, (T, B, 1))], axis=-1)                          # (T,B,P+3)

    if chunk is None:
        chunk = T if T <= _MAX_CHUNK else _MAX_CHUNK
    chunk = int(max(1, min(chunk, T)))

    # Pad T to a multiple of chunk with exact identity steps (zero MAC coeffs, decay=1).
    pad = (-T) % chunk
    if pad:
        pad_coeff = jnp.concatenate(
            [jnp.zeros((pad, B, P + 2), jnp.float32),
             jnp.ones((pad, B, 1), jnp.float32)], axis=-1)
        coeff = jnp.concatenate([coeff, pad_coeff], axis=0)

    return _kenyon_pallas(state.astype(jnp.float32), coeff, planes, chunk)


def kenyon_forward(state, pn_inputs, apl_inputs, pn_weight, apl_weight, bias,
                   dt, tau):
    """Single step — exactly the PyTorch KenyonCell.forward."""
    return kenyon_rollout(state, pn_inputs[None], apl_inputs[None],
                          pn_weight, apl_weight, bias, dt, tau)


def kenyon_forward_ref(state, pn_inputs, apl_inputs, pn_weight, apl_weight,
                       bias, dt, tau):
    """Pure-JAX reference mirroring the PyTorch forward."""
    dt_tau = dt / tau
    apl_value = jnp.matmul(apl_inputs, apl_weight)                      # (B,K)
    pn_value = jnp.matmul(pn_inputs.astype(jnp.float32), pn_weight)     # (B,1,K)
    pn_value = pn_value[:, 0, :]                                        # (B,K)
    act = jax.nn.relu(pn_value - apl_value + bias)
    return state * (1.0 - dt_tau) + dt_tau * act


if __name__ == "__main__":
    batch = 2
    tau, RC, dt = 1.0, 0.5, 0.1
    T = 8

    key = jax.random.PRNGKey(0)
    k_pnw, k_bias, k_state, k_pnin, k_aplin = jax.random.split(key, 5)

    # Parameter init matching the module's __init__ shapes.
    pn_weight = 0.5 * jax.random.normal(k_pnw, (batch, pnCells, knCells),
                                        dtype=jnp.float32)
    apl_weight = jnp.ones((1, knCells), dtype=jnp.float32)
    bias = 0.5 * jax.random.normal(k_bias, (knCells,), dtype=jnp.float32)

    # Example inputs implied by the forward pass (plus a T-step sequence).
    state = jax.random.normal(k_state, (batch, knCells), dtype=jnp.float32)
    pn_seq = jax.random.normal(k_pnin, (T, batch, 1, pnCells),
                               dtype=jnp.float32)
    apl_seq = jax.random.normal(k_aplin, (T, batch, 1), dtype=jnp.float32)

    # Pure-JAX reference rollout.
    refT = state
    ref_states = []
    for t in range(T):
        refT = kenyon_forward_ref(refT, pn_seq[t], apl_seq[t], pn_weight,
                                  apl_weight, bias, dt, tau)
        ref_states.append(refT)

    # 1) Single step == PyTorch forward.
    out1 = kenyon_forward(state, pn_seq[0], apl_seq[0], pn_weight, apl_weight,
                          bias, dt, tau)
    out1 = jax.block_until_ready(out1)
    assert out1.shape == (batch, knCells)
    assert jnp.allclose(out1, ref_states[0], atol=1e-5, rtol=1e-5), \
        "single-step mismatch"

    # 2) T-step fused rollout (single chunk) vs. looped reference.
    outT = kenyon_rollout(state, pn_seq, apl_seq, pn_weight, apl_weight, bias,
                          dt, tau)
    outT = jax.block_until_ready(outT)
    assert outT.shape == (batch, knCells)
    assert jnp.allclose(outT, ref_states[-1], atol=1e-4, rtol=1e-4), \
        "rollout mismatch"

    # 3) Multi-chunk + identity-padding path (chunk=3 -> T padded 8 -> 9, grid=3).
    outC = kenyon_rollout(state, pn_seq, apl_seq, pn_weight, apl_weight, bias,
                          dt, tau, chunk=3)
    outC = jax.block_until_ready(outC)
    assert jnp.allclose(outC, ref_states[-1], atol=1e-4, rtol=1e-4), \
        "chunked/padded rollout mismatch"

    print("KERNEL_OK")
</pallas_src>

<mosaic_0001>
module attributes {stable_mosaic.version = 11 : i64} {
  func.func @kenyon_kernel(%arg0: i32, %arg1: memref<2x50xf32, #tpu.memory_space<vmem>>, %arg2: memref<1x2x6xf32, #tpu.memory_space<vmem>>, %arg3: memref<5x2x50xf32, #tpu.memory_space<vmem>>, %arg4: memref<2x50xf32, #tpu.memory_space<vmem>>) attributes {dimension_semantics = [#tpu.dimension_semantics<arbitrary>], iteration_bounds = array<i64: 1>, scalar_prefetch = 0 : i64, scratch_operands = 0 : i64, tpu.core_type = #tpu.core_type<tc>, window_params = [{pipeline_mode = #tpu.pipeline_mode<synchronous>, transform_indices = @transform_0, window_bounds = array<i64: 2, 50>}, {transform_indices = @transform_1, window_bounds = array<i64: 1, 2, 6>}, {pipeline_mode = #tpu.pipeline_mode<synchronous>, transform_indices = @transform_2, window_bounds = array<i64: 5, 2, 50>}, {pipeline_mode = #tpu.pipeline_mode<synchronous>, transform_indices = @transform_3, window_bounds = array<i64: 2, 50>}]} {
    %c0_i32 = arith.constant 0 : i32
    %0 = arith.cmpi eq, %arg0, %c0_i32 : i32
    %1 = arith.extui %0 : i1 to i32
    %c0_i32_0 = arith.constant 0 : i32
    %2 = arith.cmpi ne, %1, %c0_i32_0 : i32
    scf.if %2 {
      %c0_18 = arith.constant 0 : index
      %c0_19 = arith.constant 0 : index
      %43 = vector.load %arg1[%c0_18, %c0_19] : memref<2x50xf32, #tpu.memory_space<vmem>>, vector<2x50xf32>
      %c0_20 = arith.constant 0 : index
      %c0_21 = arith.constant 0 : index
      %44 = vector.load %arg4[%c0_20, %c0_21] : memref<2x50xf32, #tpu.memory_space<vmem>>, vector<2x50xf32>
      tpu.vector_store %arg4[%c0_20, %c0_21], %43 {strides = array<i32>} : memref<2x50xf32, #tpu.memory_space<vmem>>, vector<2x50xf32>,
    } else {
    }
    %c0 = arith.constant 0 : index
    %c0_1 = arith.constant 0 : index
    %c0_2 = arith.constant 0 : index
    %3 = vector.load %arg3[%c0, %c0_1, %c0_2] : memref<5x2x50xf32, #tpu.memory_space<vmem>>, vector<1x2x50xf32>
    %4 = vector.shape_cast %3 : vector<1x2x50xf32> to vector<2x50xf32>
    %c1 = arith.constant 1 : index
    %c0_3 = arith.constant 0 : index
    %c0_4 = arith.constant 0 : index
    %5 = vector.load %arg3[%c1, %c0_3, %c0_4] : memref<5x2x50xf32, #tpu.memory_space<vmem>>, vector<1x2x50xf32>
    %6 = vector.shape_cast %5 : vector<1x2x50xf32> to vector<2x50xf32>
    %c2 = arith.constant 2 : index
    %c0_5 = arith.constant 0 : index
    %c0_6 = arith.constant 0 : index
    %7 = vector.load %arg3[%c2, %c0_5, %c0_6] : memref<5x2x50xf32, #tpu.memory_space<vmem>>, vector<1x2x50xf32>
    %8 = vector.shape_cast %7 : vector<1x2x50xf32> to vector<2x50xf32>
    %c3 = arith.constant 3 : index
    %c0_7 = arith.constant 0 : index
    %c0_8 = arith.constant 0 : index
    %9 = vector.load %arg3[%c3, %c0_7, %c0_8] : memref<5x2x50xf32, #tpu.memory_space<vmem>>, vector<1x2x50xf32>
    %10 = vector.shape_cast %9 : vector<1x2x50xf32> to vector<2x50xf32>
    %c4 = arith.constant 4 : index
    %c0_9 = arith.constant 0 : index
    %c0_10 = arith.constant 0 : index
    %11 = vector.load %arg3[%c4, %c0_9, %c0_10] : memref<5x2x50xf32, #tpu.memory_space<vmem>>, vector<1x2x50xf32>
    %12 = vector.shape_cast %11 : vector<1x2x50xf32> to vector<2x50xf32>
    %c0_11 = arith.constant 0 : index
    %c0_12 = arith.constant 0 : index
    %13 = vector.load %arg4[%c0_11, %c0_12] : memref<2x50xf32, #tpu.memory_space<vmem>>, vector<2x50xf32>
    %c0_i32_13 = arith.constant 0 : i32
    %14 = arith.index_cast %c0_i32_13 : i32 to index
    %c0_14 = arith.constant 0 : index
    %c0_15 = arith.constant 0 : index
    %15 = vector.load %arg2[%14, %c0_14, %c0_15] : memref<1x2x6xf32, #tpu.memory_space<vmem>>, vector<1x2x6xf32>
    %16 = vector.shape_cast %15 : vector<1x2x6xf32> to vector<2x6xf32>
    %17 = vector.extract_strided_slice %16 {offsets = [0, 0], sizes = [2, 1], strides = [1, 1]} : vector<2x6xf32> to vector<2x1xf32>
    %18 = vector.broadcast %17 : vector<2x1xf32> to vector<2x50xf32>
    %19 = arith.mulf %18, %4 : vector<2x50xf32>
    %20 = vector.extract_strided_slice %16 {offsets = [0, 1], sizes = [2, 1], strides = [1, 1]} : vector<2x6xf32> to vector<2x1xf32>
    %21 = vector.broadcast %20 : vector<2x1xf32> to vector<2x50xf32>
    %22 = arith.mulf %21, %6 : vector<2x50xf32>
    %23 = arith.addf %19, %22 : vector<2x50xf32>
    %24 = vector.extract_strided_slice %16 {offsets = [0, 2], sizes = [2, 1], strides = [1, 1]} : vector<2x6xf32> to vector<2x1xf32>
    %25 = vector.broadcast %24 : vector<2x1xf32> to vector<2x50xf32>
    %26 = arith.mulf %25, %8 : vector<2x50xf32>
    %27 = arith.addf %23, %26 : vector<2x50xf32>
    %28 = vector.extract_strided_slice %16 {offsets = [0, 3], sizes = [2, 1], strides = [1, 1]} : vector<2x6xf32> to vector<2x1xf32>
    %29 = vector.broadcast %28 : vector<2x1xf32> to vector<2x50xf32>
    %30 = arith.mulf %29, %10 : vector<2x50xf32>
    %31 = arith.addf %27, %30 : vector<2x50xf32>
    %32 = vector.extract_strided_slice %16 {offsets = [0, 4], sizes = [2, 1], strides = [1, 1]} : vector<2x6xf32> to vector<2x1xf32>
    %33 = vector.broadcast %32 : vector<2x1xf32> to vector<2x50xf32>
    %34 = arith.mulf %33, %12 : vector<2x50xf32>
    %35 = arith.addf %31, %34 : vector<2x50xf32>
    %cst = arith.constant 0.000000e+00 : f32
    %36 = vector.broadcast %cst : f32 to vector<2x50xf32>
    %37 = arith.maximumf %35, %36 : vector<2x50xf32>
    %38 = vector.extract_strided_slice %16 {offsets = [0, 5], sizes = [2, 1], strides = [1, 1]} : vector<2x6xf32> to vector<2x1xf32>
    %39 = vector.broadcast %38 : vector<2x1xf32> to vector<2x50xf32>
    %40 = arith.mulf %13, %39 : vector<2x50xf32>
    %41 = arith.addf %40, %37 : vector<2x50xf32>
    %c1_i32 = arith.constant 1 : i32
    %c0_16 = arith.constant 0 : index
    %c0_17 = arith.constant 0 : index
    %42 = vector.load %arg4[%c0_16, %c0_17] : memref<2x50xf32, #tpu.memory_space<vmem>>, vector<2x50xf32>
    tpu.vector_store %arg4[%c0_16, %c0_17], %41 {strides = array<i32>} : memref<2x50xf32, #tpu.memory_space<vmem>>, vector<2x50xf32>,
    return
  }
  func.func @transform_0(%arg0: i32) -> (i32, i32) {
    %c0_i32 = arith.constant 0 : i32
    %c0_i32_0 = arith.constant 0 : i32
    %c0_i32_1 = arith.constant 0 : i32
    return %c0_i32, %c0_i32_0 : i32, i32
  }
  func.func @transform_1(%arg0: i32) -> (i32, i32, i32) {
    %c0_i32 = arith.constant 0 : i32
    %c0_i32_0 = arith.constant 0 : i32
    %c0_i32_1 = arith.constant 0 : i32
    return %arg0, %c0_i32, %c0_i32_0 : i32, i32, i32
  }
  func.func @transform_2(%arg0: i32) -> (i32, i32, i32) {
    %c0_i32 = arith.constant 0 : i32
    %c0_i32_0 = arith.constant 0 : i32
    %c0_i32_1 = arith.constant 0 : i32
    %c0_i32_2 = arith.constant 0 : i32
    return %c0_i32, %c0_i32_0, %c0_i32_1 : i32, i32, i32
  }
  func.func @transform_3(%arg0: i32) -> (i32, i32) {
    %c0_i32 = arith.constant 0 : i32
    %c0_i32_0 = arith.constant 0 : i32
    %c0_i32_1 = arith.constant 0 : i32
    return %c0_i32, %c0_i32_0 : i32, i32
  }
}

</mosaic_0001>

<bundles_post_ra>
// kernel: tpu_custom_call.1
= control target key start
LH: loop header
LB: loop body
LE: loop exit
PB: predicated region body
PF: predicated region fallthrough
CT: control target
= control target key end

     0   :  { %8 = vsyncpa [#allocation3], 0  ;;  %s282_s0 = inlined_call_operand.hbm [shape: f32[2,50], index: 0, kind: input, shape index: {}]   ;;  %s283_s1 = inlined_call_operand.vmem [shape: f32[1,2,6], index: 1, kind: input, shape index: {}]   ;;  %s284_s2 = inlined_call_operand.hbm [shape: f32[5,2,50], index: 2, kind: input, shape index: {}]   ;;  %s285_s3 = inlined_call_operand.hbm [shape: f32[2,50], index: 3, kind: output, shape index: {}]  }
   0x1   :  { %9 = vsyncpa [#allocation6], 0 }
   0x2   :  { %10 = vsyncpa [#allocation4], 0  ;;  %s203_s12 = smov [#allocation2]   ;;  %s204_s14 = smov [#allocation5]  }
   0x3   :  { %s17_s13 = sshll.u32 %s203_s12, 4  ;;  %s28_s15 = sshll.u32 %s204_s14, 4  ;;  %s18_s13 = int_to_ptr.vmem [resolvable:$true] %s17_s13  ;;  %s234_s15 = int_to_ptr.vmem [resolvable:$true] %s28_s15 }
   0x4   :  { %s131_s18 = scalar_lea.hbm %s282_s0, 32 }
   0x5   :  { %p132_p0 = scmp.ne.s32.totalorder %s282_s0, %s131_s18  ;;  %p135_p1 = scmp.lt.u32.totalorder %s131_s18, %s282_s0 }
   0x7   :  { %p137_p2 = pnand %p135_p1, %p132_p0 }
   0x9   :  { %140 = shalt.err (!%p137_p2)
}
   0xa   :  { %s141_s23 = scalar_lea.vmem %s18_s13, 32  ;;  %p146_p4 = scmp.lt.s32.totalorder %s18_s13, %s18_s13 }
   0xb   :  { %p142_p3 = scmp.ne.s32.totalorder %s18_s13, %s141_s23  ;;  %p147_p5 = scmp.lt.s32.totalorder %s141_s23, %s141_s23 }
   0xd   :  { %p148_p6 = por %p147_p5, %p146_p4 }
   0xf   :  { %p149_p7 = pnand %p148_p6, %p142_p3 }
  0x11   :  { %152 = shalt.err (!%p149_p7)
}
  0x12   :  { %20 = dma.hbm_to_vmem [thread:$0]  %s282_s0, 32, %s18_s13, [#allocation3]  }
  0x13   :  { %s153_s28 = scalar_lea.hbm %s284_s2, 160 }
  0x14   :  { %p154_p8 = scmp.ne.s32.totalorder %s284_s2, %s153_s28  ;;  %p157_p9 = scmp.lt.u32.totalorder %s153_s28, %s284_s2 }
  0x16   :  { %p159_p10 = pnand %p157_p9, %p154_p8 }
  0x18   :  { %162 = shalt.err (!%p159_p10)
}
  0x19   :  { %s163_s6 = scalar_lea.vmem %s234_s15, 160  ;;  %p168_p12 = scmp.lt.s32.totalorder %s234_s15, %s234_s15 }
  0x1a   :  { %p164_p11 = scmp.ne.s32.totalorder %s234_s15, %s163_s6  ;;  %p169_p13 = scmp.lt.s32.totalorder %s163_s6, %s163_s6 }
  0x1c   :  { %p170_p0 = por %p169_p13, %p168_p12 }
  0x1e   :  { %p171_p1 = pnand %p170_p0, %p164_p11 }
  0x20   :  { %174 = shalt.err (!%p171_p1)
}
  0x21   :  { %s205_s0 = smov 32   ;;  %s206_s7 = smov 2  }
  0x22   :  { %34 = dma.hbm_to_vmem [thread:$0]  %s284_s2, 160, %s234_s15, [#allocation6], %s205_s0, %s205_s0, %s206_s7  }
  0x23   :  { %197 = dma.done.wait [#allocation3], 32  }
  0x24   :  { %198 = vsyncadd [#allocation3], 4294967264 }
  0x25   :  { %199 = dma.done.wait [#allocation6], 160  }
  0x26   :  { %200 = vsyncadd [#allocation6], 4294967136  ;;  %v207_v0 = vmov 0   ;;  %v208_v1 = vmov 2   ;;  %vm46_vm0 = vcmask 402432   ;;  %v209_v4 = vmov 1  }
  0x27   :  { %125 = vset.pattern.permute.xlu0 %v207_v0  ;;  %127 = vset.pattern.permute.xlu1 %v208_v1  ;;  %v45_v2 = vld [vmem:[#allocation2] sm:$0x3]  ;;  %v210_v5 = vmov 3   ;;  %v211_v6 = vmov 4   ;;  %v212_v7 = vmov 5  }
  0x28   :  { %v58_v3 = vld [vmem:[%s283_s1] sm:$0x3]  ;;  %47 = vst.msk [vmem:[#allocation7] sm:$0x3] %vm46_vm0, %v45_v2  ;;  %v48_v10 = vld [vmem:[#allocation5] sm:$0x3] }
  0x29   :  { %61 = vperm.xlu0 %125, %v58_v3   ;;  %72 = vperm.xlu1 %127, %v58_v3   ;;  %v50_v11 = vld [vmem:[#allocation5 + $0x2] sm:$0x3]  ;;  %v52_v12 = vld [vmem:[#allocation5 + $0x4] sm:$0x3]  ;;  %v54_v17 = vld [vmem:[#allocation5 + $0x6] sm:$0x3] }
  0x2a   :  { %v56_v20 = vld [vmem:[#allocation5 + $0x8] sm:$0x3]  ;;  %s213_s1 = smov [#allocation7]  }
  0x2b   :  { %s104_s2 = sshll.u32 %s213_s1, 4  ;;  %s105_s2 = int_to_ptr.vmem [resolvable:$true] %s104_s2 }
  0x2c   :  { %s175_s12 = scalar_lea.vmem %s105_s2, 32  ;;  %p180_p3 = scmp.lt.s32.totalorder %s105_s2, %s105_s2 }
  0x2d   :  { %126 = vset.pattern.permute.xlu0 %v209_v4  ;;  %128 = vset.pattern.permute.xlu1 %v210_v5  ;;  %p176_p2 = scmp.ne.s32.totalorder %s105_s2, %s175_s12  ;;  %p181_p4 = scmp.lt.s32.totalorder %s175_s12, %s175_s12 }
  0x2e   :  { %66 = vperm.xlu0 %126, %v58_v3   ;;  %78 = vperm.xlu1 %128, %v58_v3  }
  0x2f   :  { %v57_v26 = vld [vmem:[#allocation7] sm:$0x3]  ;;  %p182_p5 = por %p181_p4, %p180_p3 }
  0x31   :  { %p183_p6 = pnand %p182_p5, %p176_p2 }
  0x32   :  { %129 = vset.pattern.permute.xlu1 %v211_v6  ;;  %130 = vset.pattern.permute.xlu0 %v212_v7 }
  0x33   :  { %84 = vperm.xlu1 %129, %v58_v3   ;;  %91 = vperm.xlu0 %130, %v58_v3  }
  0xa8   :  { %v62_v8 = vpop.permute.xlu0 %61  ;;  %v73_v9 = vpop.permute.xlu1 %72 }
  0xa9   :  { %v64_v15 = vmul.f32 %v62_v8, %v48_v10  ;;  %v75_v18 = vmul.f32 %v73_v9, %v52_v12 }
  0xad   :  { %v67_v13 = vpop.permute.xlu0 %66  ;;  %v79_v14 = vpop.permute.xlu1 %78 }
  0xae   :  { %v69_v16 = vmul.f32 %v67_v13, %v50_v11  ;;  %v81_v22 = vmul.f32 %v79_v14, %v54_v17 }
  0xb0   :  { %v70_v19 = vadd.f32 %v69_v16, %v64_v15 }
  0xb2   :  { %v76_v21 = vadd.f32 %v75_v18, %v70_v19  ;;  %v85_v23 = vpop.permute.xlu1 %84  ;;  %v92_v25 = vpop.permute.xlu0 %91 }
  0xb3   :  { %v87_v24 = vmul.f32 %v85_v23, %v56_v20  ;;  %v94_v29 = vmul.f32 %v92_v25, %v57_v26 }
  0xb4   :  { %v82_v27 = vadd.f32 %v81_v22, %v76_v21 }
  0xb6   :  { %v88_v28 = vadd.f32 %v87_v24, %v82_v27 }
  0xb8   :  { %v89_v30 = vmax.f32 %v88_v28, 0.0 }
  0xba   :  { %v95_v31 = vadd.f32 %v94_v29, %v89_v30 }
  0xbc   :  { %97 = vst.msk [vmem:[#allocation7] sm:$0x3] %vm46_vm0, %v95_v31 }
  0xbd   :  { %186 = shalt.err (!%p183_p6)
}
  0xbe   :  { %s187_s15 = scalar_lea.hbm %s285_s3, 32 }
  0xbf   :  { %p188_p7 = scmp.ne.s32.totalorder %s285_s3, %s187_s15  ;;  %p191_p8 = scmp.lt.u32.totalorder %s187_s15, %s285_s3 }
  0xc1   :  { %p193_p9 = pnand %p191_p8, %p188_p7 }
  0xc3   :  { %196 = shalt.err (!%p193_p9)
}
  0xc4   :  { %107 = dma.vmem_to_hbm [thread:$0]  %s105_s2, 32, %s285_s3, [#allocation4]  }
  0xc5   :  { %201 = dma.done.wait [#allocation4], 32  }
  0xc6   :  { %202 = vsyncadd [#allocation4], 4294967264 }
  0xc7   :  { %111 = vsyncpa [#allocation3], 1 }
  0xc8   :  { %112 = vsyncpa [#allocation6], 1 }
  0xc9   :  { %113 = vsyncpa [#allocation4], 1 }

</bundles_post_ra>
